<compile_context>
chip_gen: v7x
topology: tpu7x:2x2x1
jax: 0.10.0
libtpu: 0.0.40
codegen_flags: <defaults>
</compile_context>

<pallas_src>
import functools
import math

import jax
import jax.numpy as jnp
from jax import lax
from jax.experimental import pallas as pl
from jax.experimental.pallas import tpu as pltpu

_MIB = 1024 * 1024


def _vmem_capacity_bytes():
    """Physical VMEM of the local chip (64 MiB v7x, 128 MiB v5e/v6e)."""
    try:
        return int(pltpu.get_tpu_info().vmem_capacity_bytes)
    except Exception:
        return 64 * _MIB  # conservative default (v7x-sized)


def _sdpa_kernel(q_ref, k_ref, v_ref, m_ref, *out_refs, scale, mxu_dtype):
    # q_ref: [TQ, Dk], k_ref: [Lk, Dk], v_ref: [Lk, Dv]
    # m_ref: [TQ or 1, Lk or 1] int8 (nonzero == masked), broadcast in-kernel.
    ctx_ref = out_refs[0]
    attn_ref = out_refs[1] if len(out_refs) > 1 else None

    q = q_ref[...]
    k = k_ref[...]
    v = v_ref[...]
    if mxu_dtype is not None and mxu_dtype != q.dtype:
        q = q.astype(mxu_dtype)
        k = k.astype(mxu_dtype)
    if mxu_dtype is not None and mxu_dtype != v.dtype:
        v = v.astype(mxu_dtype)

    # Fold 1/sqrt(d_k) into Q (TQ*Dk muls instead of TQ*Lk).
    q = q * jnp.asarray(scale, q.dtype)

    # scores = Q @ K^T without an explicit transpose: contract last dims.
    scores = lax.dot_general(
        q, k,
        dimension_numbers=(((1,), (1,)), ((), ())),
        preferred_element_type=jnp.float32,
    )  # [TQ, Lk] f32

    # masked_fill_(attn_mask, -1e9); mask tile broadcasts against scores.
    scores = jnp.where(m_ref[...] != 0, jnp.float32(-1000000000.0), scores)

    # Numerically stable softmax over the last axis (f32).
    row_max = jnp.max(scores, axis=-1, keepdims=True)
    exps = jnp.exp(scores - row_max)
    denom = jnp.sum(exps, axis=-1, keepdims=True)        # [TQ, 1]
    inv = pl.reciprocal(denom, approx=True)              # EUP slot
    inv = inv * (2.0 - denom * inv)                      # Newton step -> ~f32 exact
    attn = exps * inv                                    # [TQ, Lk] f32

    # context = attn @ V (f32 accumulation).
    ctx = jnp.dot(attn.astype(v.dtype), v, preferred_element_type=jnp.float32)

    ctx_ref[...] = ctx.astype(ctx_ref.dtype)
    if attn_ref is not None:
        attn_ref[...] = attn.astype(attn_ref.dtype)


def _choose_q_tile(lq, vmem_budget, per_step_bytes_fn):
    """Largest q tile <= 256 (sublane/int8-friendly) whose per-step VMEM
    footprint fits `vmem_budget`.  256 keeps MXU rows full on the 256-wide
    v6e/v7x MXU; >256 only inflates the f32 intermediates (no win on v5e)."""
    cands = [t for t in (256, 128, 64, 32, 16, 8) if lq % t == 0]
    if not cands:
        cands = [lq]
    for t in cands:
        if per_step_bytes_fn(t) <= vmem_budget:
            return t
    return cands[-1]


def scaled_dot_product_attention(Q, K, V, attn_mask, d_k, *,
                                 return_attn=True,
                                 attn_dtype=None,
                                 mxu_dtype=None):
    """Pallas-backed equivalent of ScaledDotProductAttention.forward.

    attn_mask may be any shape broadcastable to (B, H, Lq, Lk); broadcast dims
    are handled by the BlockSpec index_map (never materialized in HBM).
    Set mxu_dtype=jnp.bfloat16 for fast MXU matmuls on f32 inputs (softmax
    stays f32); set attn_dtype=jnp.bfloat16 to halve the attn writeback; set
    return_attn=False to skip the attn output entirely.
    """
    B, H, Lq, Dk = Q.shape
    Lk = K.shape[2]
    Dv = V.shape[-1]
    BH = B * H

    in_bytes = jnp.dtype(Q.dtype).itemsize
    out_dtype = Q.dtype
    attn_dtype = out_dtype if attn_dtype is None else jnp.dtype(attn_dtype)
    attn_bytes = jnp.dtype(attn_dtype).itemsize
    mxu_dtype = None if mxu_dtype is None else jnp.dtype(mxu_dtype)

    q = Q.reshape(BH, Lq, Dk)
    k = K.reshape(BH, Lk, Dk)
    v = V.reshape(BH, Lk, Dv)

    # ---- mask: keep its natural broadcastable shape (no HBM broadcast) ----
    mB, mH, mLq, mLk = attn_mask.shape
    if mB not in (1, B) or mH not in (1, H) or mLq not in (1, Lq) or mLk not in (1, Lk):
        raise ValueError(
            f"attn_mask shape {attn_mask.shape} not broadcastable to {(B, H, Lq, Lk)}")
    mask = attn_mask.reshape(mB * mH, mLq, mLk).astype(jnp.int8)

    if mB == B and mH == H:
        m_bh = lambda bh: bh
    elif mB == B:                       # mH == 1: one mask per batch
        m_bh = lambda bh: bh // H
    elif mH == H:                       # mB == 1: one mask per head
        m_bh = lambda bh: bh % H
    else:                               # mB == mH == 1: shared mask
        m_bh = lambda bh: 0

    cap = _vmem_capacity_bytes()

    # Head-resident K/V: single-buffer them when double-buffering would eat
    # >1/4 of VMEM (their block index only changes once per head, every nq
    # steps, so the exposed DMA is amortized).
    kv_bytes = Lk * (Dk + Dv) * in_bytes
    kv_bufs = 1 if 2 * kv_bytes > cap // 4 else 2
    kv_mode = pl.Buffered(1) if kv_bufs == 1 else None

    def per_step_bytes(tq):
        m_rows = tq if mLq == Lq else 1
        b = 2 * tq * Dk * in_bytes              # Q tile (double-buffered)
        b += kv_bufs * Lk * Dk * in_bytes       # K (head-resident)
        b += kv_bufs * Lk * Dv * in_bytes       # V (head-resident)
        b += 2 * m_rows * mLk * 1               # int8 mask tile
        b += 2 * tq * Dv * in_bytes             # context out tile
        if return_attn:
            b += 2 * tq * Lk * attn_bytes       # attn out tile
        b += 3 * tq * Lk * 4                    # scores/exps/attn f32 temps
        return b

    TQ = _choose_q_tile(Lq, cap // 2, per_step_bytes)
    nq = Lq // TQ

    # ---- block specs ----
    def kv_spec(d):
        if kv_mode is None:
            return pl.BlockSpec((None, Lk, d), lambda bh, qi: (bh, 0, 0))
        return pl.BlockSpec((None, Lk, d), lambda bh, qi: (bh, 0, 0),
                            pipeline_mode=kv_mode)

    if mLq == Lq:
        m_q_block = TQ
        m_qi = lambda qi: qi
    else:
        m_q_block = 1
        m_qi = lambda qi: 0

    in_specs = [
        # Q tile advances with the q-tile axis.
        pl.BlockSpec((None, TQ, Dk), lambda bh, qi: (bh, qi, 0)),
        # K / V of one head stay VMEM-resident across all q tiles of that head.
        kv_spec(Dk),
        kv_spec(Dv),
        # Mask tile (int8), broadcast dims pinned to block 0.
        pl.BlockSpec((None, m_q_block, mLk),
                     lambda bh, qi: (m_bh(bh), m_qi(qi), 0)),
    ]

    ctx_spec = pl.BlockSpec((None, TQ, Dv), lambda bh, qi: (bh, qi, 0))
    ctx_shape = jax.ShapeDtypeStruct((BH, Lq, Dv), out_dtype)
    if return_attn:
        out_specs = [ctx_spec,
                     pl.BlockSpec((None, TQ, Lk), lambda bh, qi: (bh, qi, 0))]
        out_shape = (ctx_shape, jax.ShapeDtypeStruct((BH, Lq, Lk), attn_dtype))
    else:
        out_specs = ctx_spec
        out_shape = ctx_shape

    vmem_limit = int(per_step_bytes(TQ) * 1.5)              # headroom
    vmem_limit = max(vmem_limit, 32 * _MIB)
    vmem_limit = min(vmem_limit, (cap * 3) // 4, 100 * _MIB)  # never exceed chip

    kernel = functools.partial(_sdpa_kernel,
                               scale=1.0 / math.sqrt(d_k),
                               mxu_dtype=mxu_dtype)

    grid_spec = pltpu.PrefetchScalarGridSpec(
        num_scalar_prefetch=0,
        grid=(BH, nq),
        in_specs=in_specs,
        out_specs=out_specs,
    )

    result = pl.pallas_call(
        kernel,
        grid_spec=grid_spec,
        out_shape=out_shape,
        compiler_params=pltpu.CompilerParams(
            # Shard megacore on BH (not the q-tile axis) so each v7x core
            # keeps its own head's K/V resident instead of re-DMAing them.
            dimension_semantics=("parallel", "arbitrary"),
            vmem_limit_bytes=vmem_limit,
        ),
    )(q, k, v, mask)

    if return_attn:
        ctx, attn = result
        return ctx.reshape(B, H, Lq, Dv), attn.reshape(B, H, Lq, Lk)
    return result.reshape(B, H, Lq, Dv), None


def _reference(Q, K, V, attn_mask, d_k):
    scores = jnp.einsum("bhqd,bhkd->bhqk", Q, K,
                        preferred_element_type=jnp.float32) / math.sqrt(d_k)
    scores = jnp.where(attn_mask, -1000000000.0, scores)
    attn = jax.nn.softmax(scores, axis=-1)
    context = jnp.einsum("bhqk,bhkv->bhqv", attn, V)
    return context, attn


if __name__ == "__main__":
    B, H, L, Dk, Dv = 2, 4, 8, 32, 32

    key = jax.random.PRNGKey(0)
    kq, kk, kv, km, kp = jax.random.split(key, 5)
    Q = jax.random.normal(kq, (B, H, L, Dk), dtype=jnp.float32)
    K = jax.random.normal(kk, (B, H, L, Dk), dtype=jnp.float32)
    V = jax.random.normal(kv, (B, H, L, Dv), dtype=jnp.float32)
    # Full-shape boolean mask (True == masked out), as in the torch module.
    attn_mask = jax.random.bernoulli(km, p=0.25, shape=(B, H, L, L))

    # 1) Default path: exact f32 semantics, returns (context, attn).
    context, attn = scaled_dot_product_attention(Q, K, V, attn_mask, d_k=Dk)
    jax.block_until_ready(context)
    jax.block_until_ready(attn)
    ref_ctx, ref_attn = _reference(Q, K, V, attn_mask, d_k=Dk)
    assert jnp.allclose(context, ref_ctx, atol=1e-4, rtol=1e-4), "context mismatch"
    assert jnp.allclose(attn, ref_attn, atol=1e-4, rtol=1e-4), "attn mismatch"

    # 2) Broadcastable padding mask (B,1,1,Lk): exercised without any HBM
    #    broadcast materialization.
    pad_mask = jax.random.bernoulli(kp, p=0.25, shape=(B, 1, 1, L))
    ctx2, attn2 = scaled_dot_product_attention(Q, K, V, pad_mask, d_k=Dk)
    jax.block_until_ready(ctx2)
    ref_ctx2, ref_attn2 = _reference(Q, K, V, pad_mask, d_k=Dk)
    assert jnp.allclose(ctx2, ref_ctx2, atol=1e-4, rtol=1e-4), "pad-mask context mismatch"
    assert jnp.allclose(attn2, ref_attn2, atol=1e-4, rtol=1e-4), "pad-mask attn mismatch"

    # 3) Context-only path (skips the dominant attn writeback).
    ctx3, no_attn = scaled_dot_product_attention(Q, K, V, attn_mask, d_k=Dk,
                                                 return_attn=False)
    jax.block_until_ready(ctx3)
    assert no_attn is None
    assert jnp.allclose(ctx3, ref_ctx, atol=1e-4, rtol=1e-4), "no-attn context mismatch"

    # 4) bf16 MXU path (relaxed tolerance: bf16 operand rounding).
    ctx4, attn4 = scaled_dot_product_attention(Q, K, V, attn_mask, d_k=Dk,
                                               mxu_dtype=jnp.bfloat16)
    jax.block_until_ready(ctx4)
    assert jnp.allclose(ctx4, ref_ctx, atol=0.1, rtol=0.1), "bf16 context mismatch"
    assert jnp.allclose(attn4, ref_attn, atol=0.1, rtol=0.1), "bf16 attn mismatch"

    print("KERNEL_OK")
</pallas_src>

<mosaic_0001>
module attributes {stable_mosaic.version = 11 : i64} {
  func.func @_sdpa_kernel(%arg0: i32, %arg1: i32, %arg2: memref<1x8x32xf32, #tpu.memory_space<vmem>>, %arg3: memref<1x8x32xf32, #tpu.memory_space<vmem>>, %arg4: memref<1x8x32xf32, #tpu.memory_space<vmem>>, %arg5: memref<1x8x8xi8, #tpu.memory_space<vmem>>, %arg6: memref<1x8x32xf32, #tpu.memory_space<vmem>>, %arg7: memref<1x8x8xf32, #tpu.memory_space<vmem>>) attributes {dimension_semantics = [#tpu.dimension_semantics<parallel>, #tpu.dimension_semantics<arbitrary>], iteration_bounds = array<i64: 8, 1>, scalar_prefetch = 0 : i64, scratch_operands = 0 : i64, tpu.core_type = #tpu.core_type<tc>, window_params = [{transform_indices = @transform_0, window_bounds = array<i64: 1, 8, 32>}, {transform_indices = @transform_1, window_bounds = array<i64: 1, 8, 32>}, {transform_indices = @transform_2, window_bounds = array<i64: 1, 8, 32>}, {transform_indices = @transform_3, window_bounds = array<i64: 1, 8, 8>}, {transform_indices = @transform_4, window_bounds = array<i64: 1, 8, 32>}, {transform_indices = @transform_5, window_bounds = array<i64: 1, 8, 8>}]} {
    %c0 = arith.constant 0 : index
    %c0_0 = arith.constant 0 : index
    %c0_1 = arith.constant 0 : index
    %0 = vector.load %arg2[%c0, %c0_0, %c0_1] : memref<1x8x32xf32, #tpu.memory_space<vmem>>, vector<1x8x32xf32>
    %1 = vector.shape_cast %0 : vector<1x8x32xf32> to vector<8x32xf32>
    %c0_2 = arith.constant 0 : index
    %c0_3 = arith.constant 0 : index
    %c0_4 = arith.constant 0 : index
    %2 = vector.load %arg3[%c0_2, %c0_3, %c0_4] : memref<1x8x32xf32, #tpu.memory_space<vmem>>, vector<1x8x32xf32>
    %3 = vector.shape_cast %2 : vector<1x8x32xf32> to vector<8x32xf32>
    %c0_5 = arith.constant 0 : index
    %c0_6 = arith.constant 0 : index
    %c0_7 = arith.constant 0 : index
    %4 = vector.load %arg4[%c0_5, %c0_6, %c0_7] : memref<1x8x32xf32, #tpu.memory_space<vmem>>, vector<1x8x32xf32>
    %5 = vector.shape_cast %4 : vector<1x8x32xf32> to vector<8x32xf32>
    %cst = arith.constant 0.176776692 : f32
    %6 = vector.broadcast %cst : f32 to vector<8x32xf32>
    %7 = arith.mulf %1, %6 : vector<8x32xf32>
    %cst_8 = arith.constant dense<0.000000e+00> : vector<8x8xf32>
    %8 = tpu.matmul %7, %3, %cst_8 {dimension_numbers = #tpu.dot_dimension_numbers<[1], [1], [0], [0], [0, 0, 1, 0], [], []>} : vector<8x32xf32>, vector<8x32xf32>, vector<8x8xf32> -> vector<8x8xf32>
    %c0_9 = arith.constant 0 : index
    %c0_10 = arith.constant 0 : index
    %c0_11 = arith.constant 0 : index
    %9 = vector.load %arg5[%c0_9, %c0_10, %c0_11] : memref<1x8x8xi8, #tpu.memory_space<vmem>>, vector<1x8x8xi8>
    %10 = vector.shape_cast %9 : vector<1x8x8xi8> to vector<8x8xi8>
    %c0_i8 = arith.constant 0 : i8
    %11 = vector.broadcast %c0_i8 : i8 to vector<8x8xi8>
    %12 = arith.cmpi ne, %10, %11 : vector<8x8xi8>
    %cst_12 = arith.constant -1.000000e+09 : f32
    %13 = vector.broadcast %cst_12 : f32 to vector<8x8xf32>
    %14 = arith.select %12, %13, %8 : vector<8x8xi1>, vector<8x8xf32>
    %cst_13 = arith.constant dense<0xFF800000> : vector<8xf32>
    %15 = vector.multi_reduction <maximumf>, %14, %cst_13 [1] : vector<8x8xf32> to vector<8xf32>
    %16 = vector.shape_cast %15 : vector<8xf32> to vector<8x1xf32>
    %17 = vector.broadcast %16 : vector<8x1xf32> to vector<8x8xf32>
    %18 = arith.subf %14, %17 : vector<8x8xf32>
    %19 = math.exp %18 : vector<8x8xf32>
    %cst_14 = arith.constant dense<0.000000e+00> : vector<8xf32>
    %20 = vector.multi_reduction <add>, %19, %cst_14 [1] : vector<8x8xf32> to vector<8xf32>
    %21 = vector.shape_cast %20 : vector<8xf32> to vector<8x1xf32>
    %22 = tpu.reciprocal %21 {approx = true} : vector<8x1xf32> -> vector<8x1xf32>
    %23 = arith.mulf %21, %22 : vector<8x1xf32>
    %cst_15 = arith.constant 2.000000e+00 : f32
    %24 = vector.broadcast %cst_15 : f32 to vector<8x1xf32>
    %25 = arith.subf %24, %23 : vector<8x1xf32>
    %26 = arith.mulf %22, %25 : vector<8x1xf32>
    %27 = vector.broadcast %26 : vector<8x1xf32> to vector<8x8xf32>
    %28 = arith.mulf %19, %27 : vector<8x8xf32>
    %cst_16 = arith.constant dense<0.000000e+00> : vector<8x32xf32>
    %29 = tpu.matmul %28, %5, %cst_16 {dimension_numbers = #tpu.dot_dimension_numbers<[1], [0], [0], [1], [0, 0, 1, 1], [], []>} : vector<8x8xf32>, vector<8x32xf32>, vector<8x32xf32> -> vector<8x32xf32>
    %c0_17 = arith.constant 0 : index
    %c0_18 = arith.constant 0 : index
    %c0_19 = arith.constant 0 : index
    %30 = vector.load %arg6[%c0_17, %c0_18, %c0_19] : memref<1x8x32xf32, #tpu.memory_space<vmem>>, vector<1x8x32xf32>
    %31 = vector.shape_cast %30 : vector<1x8x32xf32> to vector<8x32xf32>
    %32 = vector.shape_cast %29 : vector<8x32xf32> to vector<1x8x32xf32>
    tpu.vector_store %arg6[%c0_17, %c0_18, %c0_19], %32 {strides = array<i32>} : memref<1x8x32xf32, #tpu.memory_space<vmem>>, vector<1x8x32xf32>,
    %c0_20 = arith.constant 0 : index
    %c0_21 = arith.constant 0 : index
    %c0_22 = arith.constant 0 : index
    %33 = vector.load %arg7[%c0_20, %c0_21, %c0_22] : memref<1x8x8xf32, #tpu.memory_space<vmem>>, vector<1x8x8xf32>
    %34 = vector.shape_cast %33 : vector<1x8x8xf32> to vector<8x8xf32>
    %35 = vector.shape_cast %28 : vector<8x8xf32> to vector<1x8x8xf32>
    tpu.vector_store %arg7[%c0_20, %c0_21, %c0_22], %35 {strides = array<i32>} : memref<1x8x8xf32, #tpu.memory_space<vmem>>, vector<1x8x8xf32>,
    return
  }
  func.func @transform_0(%arg0: i32, %arg1: i32) -> (i32, i32, i32) {
    %c0_i32 = arith.constant 0 : i32
    %c0_i32_0 = arith.constant 0 : i32
    return %arg0, %arg1, %c0_i32 : i32, i32, i32
  }
  func.func @transform_1(%arg0: i32, %arg1: i32) -> (i32, i32, i32) {
    %c0_i32 = arith.constant 0 : i32
    %c0_i32_0 = arith.constant 0 : i32
    %c0_i32_1 = arith.constant 0 : i32
    return %arg0, %c0_i32, %c0_i32_0 : i32, i32, i32
  }
  func.func @transform_2(%arg0: i32, %arg1: i32) -> (i32, i32, i32) {
    %c0_i32 = arith.constant 0 : i32
    %c0_i32_0 = arith.constant 0 : i32
    %c0_i32_1 = arith.constant 0 : i32
    return %arg0, %c0_i32, %c0_i32_0 : i32, i32, i32
  }
  func.func @transform_3(%arg0: i32, %arg1: i32) -> (i32, i32, i32) {
    %c0_i32 = arith.constant 0 : i32
    %c0_i32_0 = arith.constant 0 : i32
    return %arg0, %arg1, %c0_i32 : i32, i32, i32
  }
  func.func @transform_4(%arg0: i32, %arg1: i32) -> (i32, i32, i32) {
    %c0_i32 = arith.constant 0 : i32
    %c0_i32_0 = arith.constant 0 : i32
    return %arg0, %arg1, %c0_i32 : i32, i32, i32
  }
  func.func @transform_5(%arg0: i32, %arg1: i32) -> (i32, i32, i32) {
    %c0_i32 = arith.constant 0 : i32
    %c0_i32_0 = arith.constant 0 : i32
    return %arg0, %arg1, %c0_i32 : i32, i32, i32
  }
}

</mosaic_0001>

<bundles_post_ra>
// kernel: tpu_custom_call.1
= control target key start
LH: loop header
LB: loop body
LE: loop exit
PB: predicated region body
PF: predicated region fallthrough
CT: control target
= control target key end

     0   :  { %s1520_s0 = inlined_call_operand.hbm [shape: f32[8,8,32], index: 0, kind: input, shape index: {}]   ;;  %s1521_s1 = inlined_call_operand.hbm [shape: f32[8,8,32], index: 1, kind: input, shape index: {}]   ;;  %s1522_s2 = inlined_call_operand.hbm [shape: f32[8,8,32], index: 2, kind: input, shape index: {}]   ;;  %s1523_s3 = inlined_call_operand.hbm [shape: s8[8,8,8], index: 3, kind: input, shape index: {}]   ;;  %s1524_s4 = inlined_call_operand.hbm [shape: f32[8,8,32], index: 4, kind: output, shape index: {0}]   ;;  %s1525_s5 = inlined_call_operand.hbm [shape: f32[8,8,8], index: 5, kind: output, shape index: {1}]  }
   0x1   :  { %1536 = sst [smem:[#allocation24_spill]] %s1521_s1 }
   0x2   :  { %11 = vsyncpa [#allocation3], 0 }
   0x3   :  { %13 = vsyncpa [#allocation3 + $0x1], 0 }
   0x4   :  { %14 = vsyncpa [#allocation6], 0 }
   0x5   :  { %16 = vsyncpa [#allocation6 + $0x1], 0 }
   0x6   :  { %17 = vsyncpa [#allocation9], 0 }
   0x7   :  { %19 = vsyncpa [#allocation9 + $0x1], 0 }
   0x8   :  { %20 = vsyncpa [#allocation4], 0 }
   0x9   :  { %22 = vsyncpa [#allocation4 + $0x1], 0 }
   0xa   :  { %23 = vsyncpa [#allocation12], 0 }
   0xb   :  { %25 = vsyncpa [#allocation12 + $0x1], 0  ;;  %s1188_s18 = smov 0   ;;  %s1190_s19 = smov 0  }
   0xc   :  { %s1192_s20 = smov 0   ;;  %s1194_s21 = smov 0  }
   0xd   :  { %s1196_s22 = smov 0   ;;  %s1198_s23 = smov 0  }
   0xe LB: > { %1537 = sst [smem:[#allocation18_spill]] %s1127_s18  ;;  %s1219_s24 = sadd.s32 4294967295, %s1147_s23   ;;  %s1147_s23 = sphi %s1198_s23, %s31_s23   ;;  %s1143_s22 = sphi %s1196_s22, %s1568_s22   ;;  %s1139_s21 = sphi %s1194_s21, %s1567_s21   ;;  %s1135_s20 = sphi %s1192_s20, %s1563_s20   ;;  %s1131_s19 = sphi %s1190_s19, %s1566_s19   ;;  %s1127_s18 = sphi %s1188_s18, %s1565_s18  }
   0xf   : > { %1538 = sst [smem:[#allocation19_spill]] %s1135_s20  ;;  %s775_s25 = sadd.s32 4294967294, %s1147_s23  }
  0x10   : > { %1539 = sst [smem:[#allocation20_spill]] %s1147_s23  ;;  %s43_s26 = sadd.s32 1, %s1143_s22 }
  0x11   : > { %s52_s27 = sadd.s32 1, %s1135_s20  ;;  %p45_p0 = scmp.ge.s32.totalorder %s43_s26, 8 }
  0x12   : > { %p59_p1 = scmp.ne.s32.totalorder %s1135_s20, %s1131_s19  ;;  %p60_p2 = scmp.eq.s32.totalorder %s1147_s23, 0 }
  0x13   : > { %p65_p3 = scmp.ne.s32.totalorder %s1131_s19, %s1127_s18  ;;  %s1570_s26 = smov (%p45_p0, %s43_s26), 0 }
  0x14   : > { %1540 = sst [smem:[#allocation21_spill]] %s1570_s26  ;;  %p1231_p4 = por %p60_p2, %p59_p1 }
  0x15   : > { %p66_p5 = scmp.eq.s32.totalorder %s1219_s24, 0  ;;  %s47_s29 = ssub.s32 %s1143_s22, %s1570_s26 }
  0x16   : > { %p171_p6 = scmp.eq.s32.totalorder %s1219_s24, 7  ;;  %p50_p7 = scmp.eq.s32.totalorder %s47_s29, 0 }
  0x17   : > { %p1239_p8 = por %p66_p5, %p65_p3  ;;  %p177_p10 = scmp.eq.s32.totalorder %s775_s25, 7 }
  0x18   : > { %p1243_p9 = por %p171_p6, %p59_p1  ;;  %p848_p12 = scmp.lt.s32.totalorder %s1147_s23, 8 }
  0x19   : > { %s1542_s30 = scalar_select %p1239_p8, 1, 0 }
  0x1a   : > { %s1543_s6 = scalar_select %p1243_p9, 1, 0 }
  0x1b   : > { %s1248_s7 = scalar_select %p50_p7, %s1135_s20, %s52_s27  }
  0x1c   : > { %p1250_p11 = por %p177_p10, %p65_p3  ;;  %s1256_s9 = sand.u32 1, %s1135_s20  }
  0x1d   : > { %1544 = sst [smem:[#allocation22_spill]] %s1248_s7  ;;  %s1259_s10 = sshll.u32 %s1256_s9, 3 }
  0x1e   : > { %s1545_s8 = scalar_select %p1250_p11, 1, 0 }
  0x1f   : > { %s1262_s11 = sshll.u32 %s1143_s22, 7  ;;  %p1266_p13 = pnand %p848_p12, %p1231_p4 }
  0x20   : > { %1546 = sst [smem:[#allocation23_spill]] %s1545_s8  ;;  %s244_s13 = sand.u32 1, %s1147_s23  }
  0x21   : > { %s1547_s12 = scalar_select %p1266_p13, 1, 0 }
  0x22   : > { %s1548_s1 = sld [smem:[#allocation24_spill]]  ;;  %s248_s17 = scalar_lea.vmem [#allocation5], %s1259_s10 }
  0x23   : > { %s255_s25 = sshll.u32 %s248_s17, 4  ;;  %s1282_s27 = scalar_lea.sflag [#allocation6], %s244_s13  ;;  %s1279_s25 = int_to_ptr.vmem [resolvable:$true] %s255_s25 }
  0x24   : > { %p1288_p3 = pneg %p1266_p13 }
  0x28   : > { %s1275_s16 = scalar_lea.hbm %s1548_s1, %s1262_s11  ;;  %s910_s17 = scalar_lea.hbm %s1548_s1, 1024 }
  0x29   : > { %s905_s28 = scalar_lea.hbm %s1275_s16, 128  ;;  %p911_p6 = scmp.lt.u32.totalorder %s1275_s16, %s1548_s1 }
  0x2a   : > { %p906_p2 = scmp.ne.s32.totalorder %s1275_s16, %s905_s28  ;;  %p912_p7 = scmp.lt.u32.totalorder %s910_s17, %s905_s28 }
  0x2b   : > { %p914_p12 = scmp.lt.u32.totalorder %s905_s28, %s1275_s16 }
  0x2c   : > { %p908_p4 = pnand %p1288_p3, %p906_p2  ;;  %p913_p10 = por %p912_p7, %p911_p6 }
  0x2e   : > { %p909_p5 = pneg %p908_p4  ;;  %p915_p0 = por %p914_p12, %p913_p10 }
  0x30   : > { %p916_p1 = pnand %p915_p0, %p909_p5 }
  0x32   : > { %919 = shalt.err (!%p916_p1)
}
  0x33   : > { %s920_s13 = scalar_lea.vmem %s1279_s25, 128  ;;  %s1149_s14 = smov [#allocation5]  }
  0x34   : > { %p921_p2 = scmp.ne.s32.totalorder %s1279_s25, %s920_s13  ;;  %s925_s15 = sshll.u32 %s1149_s14, 4  ;;  %s926_s15 = int_to_ptr.vmem [resolvable:$false] %s925_s15 }
  0x35   : > { %s927_s26 = scalar_lea.vmem %s926_s15, 256  ;;  %p928_p9 = scmp.lt.s32.totalorder %s1279_s25, %s926_s15 }
  0x36   : > { %p923_p4 = pnand %p921_p2, %p1288_p3  ;;  %p929_p8 = scmp.lt.s32.totalorder %s927_s26, %s920_s13 }
  0x38   : > { %p924_p11 = pneg %p923_p4  ;;  %p930_p6 = por %p929_p8, %p928_p9 }
  0x3a   : > { %p931_p7 = pnand %p930_p6, %p924_p11 }
  0x3c   : > { %934 = shalt.err (!%p931_p7)
}
  0x3d   : > { %834 = dma.hbm_to_vmem [thread:$0]  (!%p1266_p13), %s1275_s16, 128, %s1279_s25, %s1282_s27  }
  0x3e   : > { %p1550_p0 = scmp.lt.s32.totalorder %s1147_s23, 9  ;;  %p1551_p1 = scmp.ge.s32.totalorder %s1147_s23, 1 }
  0x3f   : > { %s1324_s13 = scalar_lea.hbm %s1520_s0, %s1262_s11  ;;  %s229_s14 = scalar_lea.vmem [#allocation2], %s1259_s10 }
  0x40   : > { %p1316_p5 = pnand %p1551_p1, %p1550_p0  ;;  %s237_s15 = sshll.u32 %s229_s14, 4  ;;  %s1327_s15 = int_to_ptr.vmem [resolvable:$true] %s237_s15 }
  0x41   : > { %s1333_s26 = scalar_lea.hbm %s1522_s2, %s1262_s11  ;;  %s226_s1 = scalar_lea.sflag [#allocation3], %s1256_s9 }
  0x42   : > { %s1552_s7 = scalar_select %p1316_p5, 1, 0 }
  0x43   : > { %s935_s20 = scalar_lea.hbm %s1324_s13, 128  ;;  %s940_s8 = scalar_lea.hbm %s1520_s0, 1024 }
  0x44   : > { %p936_p8 = scmp.ne.s32.totalorder %s1324_s13, %s935_s20  ;;  %p941_p10 = scmp.lt.u32.totalorder %s1324_s13, %s1520_s0 }
  0x45   : > { %p942_p12 = scmp.lt.u32.totalorder %s940_s8, %s935_s20  ;;  %p944_p4 = scmp.lt.u32.totalorder %s935_s20, %s1324_s13 }
  0x46   : > { %p938_p9 = pnand %p936_p8, %p1288_p3 }
  0x47   : > { %p943_p2 = por %p942_p12, %p941_p10 }
  0x48   : > { %p939_p11 = pneg %p938_p9 }
  0x49   : > { %p945_p6 = por %p944_p4, %p943_p2 }
  0x4b   : > { %p946_p7 = pnand %p945_p6, %p939_p11 }
  0x4d   : > { %949 = shalt.err (!%p946_p7)
}
  0x4e   : > { %s950_s11 = scalar_lea.vmem %s1327_s15, 128  ;;  %s1150_s14 = smov [#allocation2]  }
  0x4f   : > { %p951_p0 = scmp.ne.s32.totalorder %s1327_s15, %s950_s11  ;;  %s955_s16 = sshll.u32 %s1150_s14, 4  ;;  %s956_s16 = int_to_ptr.vmem [resolvable:$false] %s955_s16 }
  0x50   : > { %s957_s18 = scalar_lea.vmem %s956_s16, 256  ;;  %p958_p9 = scmp.lt.s32.totalorder %s1327_s15, %s956_s16 }
  0x51   : > { %p953_p1 = pnand %p951_p0, %p1288_p3  ;;  %p959_p5 = scmp.lt.s32.totalorder %s957_s18, %s950_s11 }
  0x53   : > { %p954_p8 = pneg %p953_p1  ;;  %p960_p10 = por %p959_p5, %p958_p9 }
  0x55   : > { %p961_p12 = pnand %p960_p10, %p954_p8 }
  0x57   : > { %964 = shalt.err (!%p961_p12)
}
  0x58   : > { %831 = dma.hbm_to_vmem [thread:$0]  (!%p1266_p13), %s1324_s13, 128, %s1327_s15, %s226_s1  }
  0x59   : > { %s266_s20 = scalar_lea.vmem [#allocation7], %s1259_s10  ;;  %s784_s8 = sshll.u32 %s1256_s9, 1 }
  0x5a   : > { %s273_s23 = sshll.u32 %s266_s20, 4  ;;  %s965_s25 = scalar_lea.hbm %s1333_s26, 128  ;;  %s274_s23 = int_to_ptr.vmem [resolvable:$true] %s273_s23 }
  0x5b   : > { %p966_p5 = scmp.ne.s32.totalorder %s1333_s26, %s965_s25  ;;  %s970_s11 = scalar_lea.hbm %s1522_s2, 1024 }
  0x5c   : > { %p971_p4 = scmp.lt.u32.totalorder %s1333_s26, %s1522_s2  ;;  %p972_p6 = scmp.lt.u32.totalorder %s970_s11, %s965_s25 }
  0x5d   : > { %p968_p11 = pnand %p966_p5, %p1288_p3  ;;  %p974_p0 = scmp.lt.u32.totalorder %s965_s25, %s1333_s26 }
  0x5e   : > { %p973_p7 = por %p972_p6, %p971_p4 }
  0x5f   : > { %p969_p2 = pneg %p968_p11 }
  0x60   : > { %p975_p1 = por %p974_p0, %p973_p7 }
  0x62   : > { %p976_p8 = pnand %p975_p1, %p969_p2 }
  0x64   : > { %979 = shalt.err (!%p976_p8)
}
  0x65   : > { %s980_s1 = scalar_lea.vmem %s274_s23, 128  ;;  %s1151_s10 = smov [#allocation7]  }
  0x66   : > { %p981_p9 = scmp.ne.s32.totalorder %s274_s23, %s980_s1  ;;  %s985_s13 = sshll.u32 %s1151_s10, 4  ;;  %s986_s13 = int_to_ptr.vmem [resolvable:$false] %s985_s13 }
  0x67   : > { %s987_s15 = scalar_lea.vmem %s986_s13, 256  ;;  %p988_p5 = scmp.lt.s32.totalorder %s274_s23, %s986_s13 }
  0x68   : > { %p983_p10 = pnand %p981_p9, %p1288_p3  ;;  %p989_p11 = scmp.lt.s32.totalorder %s987_s15, %s980_s1 }
  0x6a   : > { %p984_p12 = pneg %p983_p10  ;;  %p990_p13 = por %p989_p11, %p988_p5 }
  0x6c   : > { %p991_p4 = pnand %p990_p13, %p984_p12 }
  0x6e   : > { %994 = shalt.err (!%p991_p4)
}
  0x6f   : > { %p1553_p6 = scmp.ne.s32.totalorder %s1547_s12, 0  ;;  %s785_s18 = sshll.u32 %s1143_s22, 5 }
  0x70   : > { %s1381_s28 = scalar_lea.hbm %s1523_s3, %s785_s18  ;;  %s284_s17 = scalar_lea.vmem [#allocation8], %s784_s8 }
  0x71   : > { %837 = dma.hbm_to_vmem [thread:$0]  (!%p1553_p6), %s1333_s26, 128, %s274_s23, %s1282_s27  }
  0x72   : > { %s292_s11 = sshll.u32 %s284_s17, 4  ;;  %s281_s14 = scalar_lea.sflag [#allocation9], %s1256_s9  ;;  %s293_s11 = int_to_ptr.vmem [resolvable:$true] %s292_s11 }
  0x73   : > { %s995_s16 = scalar_lea.hbm %s1381_s28, 32  ;;  %s1000_s23 = scalar_lea.hbm %s1523_s3, 256 }
  0x74   : > { %p996_p13 = scmp.ne.s32.totalorder %s1381_s28, %s995_s16  ;;  %p1001_p0 = scmp.lt.u32.totalorder %s1381_s28, %s1523_s3 }
  0x75   : > { %p1002_p1 = scmp.lt.u32.totalorder %s1000_s23, %s995_s16  ;;  %p1004_p9 = scmp.lt.u32.totalorder %s995_s16, %s1381_s28 }
  0x76   : > { %p998_p2 = pnand %p996_p13, %p1288_p3 }
  0x77   : > { %p1003_p8 = por %p1002_p1, %p1001_p0 }
  0x78   : > { %p999_p7 = pneg %p998_p2 }
  0x79   : > { %p1005_p10 = por %p1004_p9, %p1003_p8 }
  0x7b   : > { %p1006_p12 = pnand %p1005_p10, %p999_p7 }
  0x7d   : > { %1009 = shalt.err (!%p1006_p12)
}
  0x7e   : > { %s1010_s9 = scalar_lea.vmem %s293_s11, 32  ;;  %s1152_s8 = smov [#allocation8]  }
  0x7f   : > { %p1011_p5 = scmp.ne.s32.totalorder %s293_s11, %s1010_s9  ;;  %s1015_s13 = sshll.u32 %s1152_s8, 4  ;;  %s1016_s13 = int_to_ptr.vmem [resolvable:$false] %s1015_s13 }
  0x80   : > { %s1017_s15 = scalar_lea.vmem %s1016_s13, 64  ;;  %p1018_p13 = scmp.lt.s32.totalorder %s293_s11, %s1016_s13 }
  0x81   : > { %p1013_p11 = pnand %p1011_p5, %p1288_p3  ;;  %p1019_p2 = scmp.lt.s32.totalorder %s1017_s15, %s1010_s9 }
  0x83   : > { %p1014_p4 = pneg %p1013_p11  ;;  %p1020_p6 = por %p1019_p2, %p1018_p13 }
  0x85   : > { %p1021_p0 = pnand %p1020_p6, %p1014_p4 }
  0x87   : > { %1024 = shalt.err (!%p1021_p0)
}
  0x88   : > { %p1554_p1 = scmp.ne.s32.totalorder %s1547_s12, 0  ;;  %p1555_p7 = scmp.ne.s32.totalorder %s1552_s7, 0 }
  0x89   : > { %s1406_s29 = sand.u32 (!%p1555_p7), 1, %s1131_s19   ;;  %p1556_p3 = scmp.ne.s32.totalorder (!%p1555_p7), %s1542_s30, 0 }
  0x8a   : > { %840 = dma.hbm_to_vmem [thread:$0]  (!%p1554_p1), %s1381_s28, 32, %s293_s11, %s281_s14  }
  0x8b   : > { %301 = sbr.rel (%p1555_p7) target bundleno = 918 (0x396), region = 36  ;;  %s1409_s18 = sshll.u32 (!%p1555_p7), %s1406_s29, 3 }
  0x8c   : > { %s304_s20 = scalar_lea.sflag (!%p1555_p7), [#allocation3], %s1406_s29  ;;  %s307_s25 = scalar_lea.vmem (!%p1555_p7), [#allocation2], %s1409_s18 }
  0x92   : > { %1106 = dma.done.wait (%p1556_p3), %s304_s20, 128  }
  0x93   : > { %1108 = vsyncadd (%p1556_p3), %s304_s20, 4294967168  ;;  %s312_s12 = sand.u32 1, %s1219_s24   ;;  %s316_s28 = scalar_lea.vmem [#allocation5], %s1409_s18 }
  0x94   : > { %s313_s7 = scalar_lea.sflag [#allocation6], %s312_s12 }
  0x95   : > { %1110 = dma.done.wait (%p1556_p3), %s313_s7, 256  }
  0x96   : > { %1112 = vsyncadd (%p1556_p3), %s313_s7, 4294967040  ;;  %s790_s17 = sshll.u32 %s1406_s29, 1  ;;  %s325_s11 = scalar_lea.vmem [#allocation7], %s1409_s18 }
  0x97   : > { %s331_s14 = scalar_lea.sflag [#allocation9], %s1406_s29  ;;  %s334_s16 = scalar_lea.vmem [#allocation8], %s790_s17 }
  0x98   : > { %1114 = dma.done.wait (%p1556_p3), %s331_s14, 32  }
  0x99   : > { %1116 = vsyncadd (%p1556_p3), %s331_s14, 4294967264  ;;  %v1153_v0 = vmov 0.0   ;;  %vm1154_vm0 = vmmov 0   ;;  %vm387_vm1 = vcmask 261120   ;;  %v384_v1 = vld [vmem:[%s316_s28] sm:$0xff]  ;;  %v383_v2 = vld [vmem:[%s307_s25] sm:$0xff] }
  0x9a   : > { %806 = vmatprep.subr.mxu0 %v1153_v0  ;;  %808 = vmatprep.mubr.msk.f32.mxu0 %vm1154_vm0, %v1153_v0  ;;  %v386_v3 = vmul.f32 0.17677669, %v383_v2  ;;  %v464_v4 = vld [vmem:[%s334_s16] sm:$0x3]  ;;  %v1155_v5 = vmov 0   ;;  %vm470_vm4 = vcmask 64512  }
  0x9b   : > { %811 = vmatprep.subr.mxu1 %v1153_v0  ;;  %813 = vmatprep.mubr.msk.f32.mxu1 %vm1154_vm0, %v1153_v0  ;;  %vm465_vm2 = vnez %v464_v4  ;;  %v385_v17 = vld [vmem:[%s325_s11] sm:$0xff]  ;;  %s380_s24 = scalar_lea.vmem [#allocation11], %s1409_s18  ;;  %s798_s30 = sshll.u32 %s1139_s21, 7 }
  0x9c   : > { %807 = vmatpush3.xpose.msk.msra.mxu0 %vm387_vm1, %v384_v1  ;;  %v466_v6 = vsel %vm465_vm2, 16843009, %v1155_v5  ;;  %812 = vmatpush3.msra.mxu1 %v385_v17  ;;  %s1445_s23 = scalar_lea.hbm %s1525_s5, %s798_s30  ;;  %s594_s1 = sshll.u32 %s380_s24, 4  ;;  %s595_s1 = int_to_ptr.vmem [resolvable:$true] %s594_s1 }
  0x9d   : > { %v467_v7 = vunpack.c.0.s8 %v466_v6  ;;  %s566_s10 = scalar_lea.sflag [#allocation12], %s1406_s29  ;;  %s1025_s9 = scalar_lea.vmem %s595_s1, 128 }
  0x9e   : > { %p1026_p6 = scmp.ne.s32.totalorder %s595_s1, %s1025_s9  ;;  %p1557_p8 = scmp.ne.s32.totalorder %s1543_s6, 0 }
  0x9f   : > { %809 = vmatmul.mubr.msk.f32.vlgmr.msra.gmra.mrb[0].mxu0 %vm387_vm1, %v386_v3  ;;  %vm468_vm3 = vcmp.ne.s32.totalorder %v467_v7, 0  ;;  %s1156_s8 = smov [#allocation11]  }
  0xa0   : > { %p1027_p9 = pnand %p1026_p6, %p1557_p8  ;;  %s1029_s13 = sshll.u32 %s1156_s8, 4  ;;  %s1030_s13 = int_to_ptr.vmem [resolvable:$false] %s1029_s13 }
  0xa1   : > { %s1031_s15 = scalar_lea.vmem %s1030_s13, 256  ;;  %p1032_p12 = scmp.lt.s32.totalorder %s595_s1, %s1030_s13 }
  0xa2   : > { %p1028_p10 = pneg %p1027_p9  ;;  %p1033_p5 = scmp.lt.s32.totalorder %s1031_s15, %s1025_s9 }
  0xa4   : > { %p1034_p11 = por %p1033_p5, %p1032_p12 }
  0xa6   : > { %p1035_p4 = pnand %p1034_p11, %p1028_p10 }
 0x172   : > { %v460_v8 = vpop.f32.mrb[0].mxu0 }
 0x173   : > { %v469_v9 = vsel %vm468_vm3, -1e+09, %v460_v8  ;;  %v810_v10 = vpop.f32.mrb[1].mxu0 }
 0x174   : > { %v471_v11 = vsel %vm470_vm4, %v469_v9, -inf }
 0x175   : > { %472 = vmax.xlane.f32.xlu0 %v471_v11 }
 0x202   : > { %v473_v12 = vpop.xlane.xlu0 %472 }
 0x203   : > { %v474_v13 = vsub.f32 %v469_v9, %v473_v12 }
 0x205   : > { %v475_v14 = vmul.f32 1.442695, %v474_v13 }
 0x207   : > { %901 = vpow2.f32 %v475_v14 }
 0x211   : > { %v902_v15 = vpop.eup %901 }
 0x212   : > { %v477_v16 = vsel %vm470_vm4, %v902_v15, 0.0 }
 0x213   : > { %478 = vadd.xlane.f32.xlu0 %v477_v16 }
 0x2a0   : > { %v479_v18 = vpop.xlane.xlu0 %478 }
 0x2a1   : > { %903 = vrcp.f32 %v479_v18 }
 0x2ab   : > { %v904_v19 = vpop.eup %903 }
 0x2ac   : > { %v481_v20 = vmul.f32 %v904_v19, %v479_v18 }
 0x2ae   : > { %v482_v21 = vsub.f32 2.0, %v481_v20 }
 0x2b0   : > { %v483_v22 = vmul.f32 %v904_v19, %v482_v21 }
 0x2b2   : > { %v484_v23 = vmul.f32 %v902_v15, %v483_v22 }
 0x2b4   : > { %814 = vmatmul.mubr.msk.f32.vlgmr.msra.gmra.mrb[0].mxu1 %vm470_vm4, %v484_v23  ;;  %559 = vst.msk [vmem:[%s380_s24] sm:$0xff] %vm470_vm4, %v484_v23 }
 0x2b5   : > { %1038 = shalt.err (!%p1035_p4)
}
 0x2b6   : > { %s1039_s20 = scalar_lea.hbm %s1445_s23, 128  ;;  %s1043_s7 = scalar_lea.hbm %s1525_s5, 1024 }
 0x2b7   : > { %p1040_p13 = scmp.ne.s32.totalorder %s1445_s23, %s1039_s20  ;;  %p1044_p1 = scmp.lt.u32.totalorder %s1445_s23, %s1525_s5 }
 0x2b8   : > { %p1045_p7 = scmp.lt.u32.totalorder %s1043_s7, %s1039_s20  ;;  %p1047_p6 = scmp.lt.u32.totalorder %s1039_s20, %s1445_s23 }
 0x2b9   : > { %p1041_p2 = pnand %p1040_p13, %p1557_p8 }
 0x2ba   : > { %p1046_p3 = por %p1045_p7, %p1044_p1 }
 0x2bb   : > { %p1042_p0 = pneg %p1041_p2 }
 0x2bc   : > { %p1048_p9 = por %p1047_p6, %p1046_p3 }
 0x2be   : > { %p1049_p10 = pnand %p1048_p9, %p1042_p0 }
 0x2c0   : > { %1052 = shalt.err (!%p1049_p10)
}
 0x2c1   : > { %825 = dma.vmem_to_hbm [thread:$0]  (%p1557_p8), %s595_s1, 128, %s1445_s23, %s566_s10  }
 0x2c2   : > { %s373_s11 = scalar_lea.vmem [#allocation10], %s1409_s18  ;;  %s1471_s27 = scalar_lea.hbm %s1524_s4, %s798_s30 }
 0x2c3   : > { %s580_s14 = sshll.u32 %s373_s11, 4  ;;  %s561_s26 = scalar_lea.sflag [#allocation4], %s1406_s29  ;;  %s1473_s14 = int_to_ptr.vmem [resolvable:$true] %s580_s14 }
 0x2c4   : > { %s1053_s9 = scalar_lea.vmem %s1473_s14, 128  ;;  %s1157_s21 = smov [#allocation10]  }
 0x2c5   : > { %p1054_p12 = scmp.ne.s32.totalorder %s1473_s14, %s1053_s9  ;;  %s1057_s18 = sshll.u32 %s1157_s21, 4  ;;  %s1058_s18 = int_to_ptr.vmem [resolvable:$false] %s1057_s18 }
 0x2c6   : > { %s1059_s30 = scalar_lea.vmem %s1058_s18, 256  ;;  %p1060_p4 = scmp.lt.s32.totalorder %s1473_s14, %s1058_s18 }
 0x2c7   : > { %p1055_p5 = pnand %p1054_p12, %p1557_p8  ;;  %p1061_p13 = scmp.lt.s32.totalorder %s1059_s30, %s1053_s9 }
 0x2c9   : > { %p1056_p11 = pneg %p1055_p5  ;;  %p1062_p2 = por %p1061_p13, %p1060_p4 }
 0x2cb   : > { %p1063_p0 = pnand %p1062_p2, %p1056_p11 }
 0x387   : > { %v554_v24 = vpop.f32.mrb[0].mxu1 }
 0x388   : > { %558 = vst.msk [vmem:[%s373_s11] sm:$0xff] %vm387_vm1, %v554_v24  ;;  %v815_v25 = vpop.f32.mrb[1].mxu1 }
 0x389   : > { %1066 = shalt.err (!%p1063_p0)
}
 0x38a   : > { %s1067_s29 = scalar_lea.hbm %s1471_s27, 128  ;;  %s1071_s10 = scalar_lea.hbm %s1524_s4, 1024 }
 0x38b   : > { %p1068_p1 = scmp.ne.s32.totalorder %s1471_s27, %s1067_s29  ;;  %p1072_p6 = scmp.lt.u32.totalorder %s1471_s27, %s1524_s4 }
 0x38c   : > { %p1073_p9 = scmp.lt.u32.totalorder %s1071_s10, %s1067_s29  ;;  %p1075_p12 = scmp.lt.u32.totalorder %s1067_s29, %s1471_s27 }
 0x38d   : > { %p1069_p7 = pnand %p1068_p1, %p1557_p8 }
 0x38e   : > { %p1074_p10 = por %p1073_p9, %p1072_p6 }
 0x38f   : > { %p1070_p3 = pneg %p1069_p7 }
 0x390   : > { %p1076_p5 = por %p1075_p12, %p1074_p10 }
 0x392   : > { %p1077_p11 = pnand %p1076_p5, %p1070_p3 }
 0x394   : > { %1080 = shalt.err (!%p1077_p11)
}
 0x395   : > { %824 = dma.vmem_to_hbm [thread:$0]  (%p1557_p8), %s1473_s14, 128, %s1471_s27, %s561_s26  }
 0x396 PF: > { %s1558_s15 = sld [smem:[#allocation20_spill]]  ;;  %s1559_s20 = sld [smem:[#allocation18_spill]] }
 0x397   : > { %s1560_s25 = sld [smem:[#allocation23_spill]] }
 0x39c   : > { %p849_p4 = scmp.ge.s32.totalorder %s1558_s15, 2  ;;  %s606_s12 = sand.u32 1, %s1559_s20  }
 0x39d   : > { %p1561_p13 = scmp.ne.s32.totalorder %s1560_s25, 0  ;;  %s607_s7 = scalar_lea.sflag [#allocation4], %s606_s12 }
 0x39f   : > { %p842_p2 = pnand %p849_p4, %p1561_p13 }
 0x3a1   : > { %1118 = dma.done.wait (!%p842_p2), %s607_s7, 128  }
 0x3a2   : > { %1120 = vsyncadd (!%p842_p2), %s607_s7, 4294967168  ;;  %s616_s28 = scalar_lea.sflag [#allocation12], %s606_s12 }
 0x3a3   : > { %1122 = dma.done.wait (!%p842_p2), %s616_s28, 128  }
 0x3a4   : > { %1124 = vsyncadd (!%p842_p2), %s616_s28, 4294967168  ;;  %s31_s23 = sadd.s32 1, %s1558_s15   ;;  %s1562_s6 = sld [smem:[#allocation19_spill]] }
 0x3a5   : > { %p28_p0 = scmp.ge.s32.totalorder %s31_s23, 10   ;;  %s1563_s20 = sld [smem:[#allocation22_spill]] }
 0x3a6   : > { %s1564_s17 = sld [smem:[#allocation21_spill]]  ;;  %s1565_s18 = smov %s1131_s19 }
 0x3a7   : > { %s1567_s21 = smov %s1143_s22  ;;  %30 = sbr.rel (!%p28_p0) target bundleno = 14 (0xe), region = 135 }
 0x3aa   : > { %s1566_s19 = smov %s1562_s6 }
 0x3ac   : > { %s1568_s22 = smov %s1564_s17 }
 0x3ae   :  { %621 = vsyncpa [#allocation3], 1 }
 0x3af   :  { %623 = vsyncpa [#allocation3 + $0x1], 1 }
 0x3b0   :  { %624 = vsyncpa [#allocation6], 1 }
 0x3b1   :  { %626 = vsyncpa [#allocation6 + $0x1], 1 }
 0x3b2   :  { %627 = vsyncpa [#allocation9], 1 }
 0x3b3   :  { %629 = vsyncpa [#allocation9 + $0x1], 1 }
 0x3b4   :  { %630 = vsyncpa [#allocation4], 1 }
 0x3b5   :  { %632 = vsyncpa [#allocation4 + $0x1], 1 }
 0x3b6   :  { %633 = vsyncpa [#allocation12], 1 }
 0x3b7   :  { %635 = vsyncpa [#allocation12 + $0x1], 1 }

</bundles_post_ra>
